<compile_context>
chip_gen: v6e
topology: v6e:2x2x1
jax: 0.10.0
libtpu: 0.0.40
codegen_flags: <defaults>
</compile_context>

<pallas_src>
from functools import partial
from math import sqrt

import jax
import jax.numpy as jnp
from jax.experimental import pallas as pl
from jax.experimental.pallas import tpu as pltpu

# ---- module-consistent problem configuration ------------------------------
DIM_IN = 32
DIM_K = 16
DIM_V = 16
NH = 2                      # num_heads (kernel specializes softmax to NH == 2)
DK = DIM_K // NH            # per-head key dim  = 8
DV = DIM_V // NH            # per-head value dim = 8
NORM = 1.0 / sqrt(DK)       # self._norm_fact

# Packed-weight column layout (built once on the host in pack_weights):
#   [0      : DK     )  q0 * NORM
#   [DK     : 2*DK   )  q1 * NORM
#   [2*DK   : 3*DK   )  kd  = k0 - k1
#   [COL_V            : COL_V +   DIM_V)  base       (v1 interleaved at even & odd cols)
#   [COL_V +   DIM_V  : COL_V + 2*DIM_V)  delta_even ((v0 - v1) at even cols, 0 at odd)
#   [COL_V + 2*DIM_V  : COL_V + 3*DIM_V)  delta_odd  (0 at even cols, (v0 - v1) at odd)
COL_V = 3 * DK
W_COLS = COL_V + 3 * DIM_V          # 24 + 48 = 72

assert NH == 2, "kernel specializes the softmax to the module default num_heads=2"


def _round_up(n, m):
    return ((n + m - 1) // m) * m


def _stable_sigmoid(d):
    # Numerically stable sigmoid built from exp/where/div (all Mosaic-safe);
    # replaces the previous approx-reciprocal path that broke the tolerance.
    e = jnp.exp(-jnp.abs(d))
    return jnp.where(d >= 0, 1.0 / (1.0 + e), e / (1.0 + e))


def mhsa_kernel(x_ref, w_ref, o_ref):
    """One row-tile of the fused forward pass.

    x_ref : (TR, DIM_IN)        input rows
    w_ref : (DIM_IN, W_COLS)    packed weight (resident across grid steps)
    o_ref : (TR, DIM_V)         head-interleaved output rows
    """
    x = x_ref[...]

    # Single fused projection on the MXU. Everything constant (norm scale,
    # k-head difference, head-interleave scatter) is baked into w.
    proj = jnp.dot(x, w_ref[...], preferred_element_type=jnp.float32)  # (TR, W_COLS)

    q0 = proj[:, 0:DK]                       # q head 0, pre-scaled by 1/sqrt(dk)
    q1 = proj[:, DK:2 * DK]                  # q head 1, pre-scaled
    kd = proj[:, 2 * DK:3 * DK]              # k0 - k1
    base = proj[:, COL_V:COL_V + DIM_V]                   # v1 at all interleaved cols
    d_ev = proj[:, COL_V + DIM_V:COL_V + 2 * DIM_V]       # (v0 - v1) at even cols
    d_od = proj[:, COL_V + 2 * DIM_V:COL_V + 3 * DIM_V]   # (v0 - v1) at odd cols

    # NH == 2: softmax([s0, s1]) == [sigmoid(s0 - s1), 1 - sigmoid(s0 - s1)].
    d0 = jnp.sum(q0 * kd, axis=-1, keepdims=True)   # (s00 - s01) / sqrt(dk)
    d1 = jnp.sum(q1 * kd, axis=-1, keepdims=True)   # (s10 - s11) / sqrt(dk)
    p0 = _stable_sigmoid(d0)                         # dist[:, 0, 0]
    p1 = _stable_sigmoid(d1)                         # dist[:, 1, 0]

    # out[:, 2d]   = p0*v0[:,d] + (1-p0)*v1[:,d]   (query head 0)
    # out[:, 2d+1] = p1*v0[:,d] + (1-p1)*v1[:,d]   (query head 1)
    # == base + p0*delta_even + p1*delta_odd, already head-interleaved.
    o_ref[...] = (base + p0 * d_ev + p1 * d_od).astype(o_ref.dtype)


def pack_weights(wq, wk, wv, *, dtype=jnp.float32):
    """One-time host-side packing of the three nn.Linear weights (out, in).

    Folds the 1/sqrt(dk) scale, the NH==2 key-head difference and the
    transpose(1,2).reshape head-interleave into a single (DIM_IN, W_COLS)
    operand. Use dtype=jnp.bfloat16 on v6e/v7x for MXU-native matmuls.
    """
    wq_s = (wq * NORM).T                      # (DIM_IN, DIM_K): q0|q1 scaled
    wkd = (wk[:DK, :] - wk[DK:, :]).T         # (DIM_IN, DK):    k0 - k1
    v0 = wv[:DV, :].T                         # (DIM_IN, DV)
    v1 = wv[DV:, :].T                         # (DIM_IN, DV)
    dvw = v0 - v1
    zeros = jnp.zeros_like(v0)

    def interleave(a, b):
        # columns [a_0, b_0, a_1, b_1, ...] -> (DIM_IN, 2*DV)
        return jnp.stack([a, b], axis=-1).reshape(DIM_IN, 2 * DV)

    base = interleave(v1, v1)            # v1 feeds both even and odd cols
    d_even = interleave(dvw, zeros)      # (v0 - v1) only at even cols
    d_odd = interleave(zeros, dvw)       # (v0 - v1) only at odd cols

    return jnp.concatenate([wq_s, wkd, base, d_even, d_odd], axis=1).astype(dtype)


@partial(jax.jit, static_argnames=("block_rows",))
def multi_head_self_attention(x, w_packed, *, block_rows=256):
    """x: (B, DIM_IN) f32; w_packed: (DIM_IN, W_COLS) from pack_weights."""
    b = x.shape[0]
    # Row tile: big enough to amortize the ~0.35us/step pipeline overhead,
    # clamped for tiny inputs so we do not pad 8 rows up to 256.
    tr = min(block_rows, _round_up(b, 8))
    b_pad = _round_up(b, tr)
    if b_pad != b:
        x = jnp.pad(x, ((0, b_pad - b), (0, 0)))

    out = pl.pallas_call(
        mhsa_kernel,
        out_shape=jax.ShapeDtypeStruct((b_pad, DIM_V), jnp.float32),
        grid_spec=pltpu.PrefetchScalarGridSpec(
            num_scalar_prefetch=0,
            grid=(b_pad // tr,),
            in_specs=[
                pl.BlockSpec((tr, DIM_IN), lambda i: (i, 0)),
                pl.BlockSpec((DIM_IN, W_COLS), lambda i: (0, 0)),  # resident weight
            ],
            out_specs=pl.BlockSpec((tr, DIM_V), lambda i: (i, 0)),
        ),
        compiler_params=pltpu.CompilerParams(
            dimension_semantics=("parallel",),  # shard row tiles across TCs (v7x)
        ),
    )(x, w_packed)
    return out[:b]


def reference(x, wq, wk, wv):
    """Pure-JAX transliteration of the PyTorch forward, for verification."""
    b = x.shape[0]
    q = (x @ wq.T).reshape(b, NH, DK)
    k = (x @ wk.T).reshape(b, NH, DK)
    v = (x @ wv.T).reshape(b, NH, DV)
    dist = jnp.einsum('bid,bjd->bij', q, k) * NORM
    dist = jax.nn.softmax(dist, axis=-1)
    att = jnp.einsum('bij,bjd->bid', dist, v)
    return jnp.transpose(att, (0, 2, 1)).reshape(b, DIM_V)


if __name__ == "__main__":
    key = jax.random.PRNGKey(0)
    kx, kq, kk, kv, kx2 = jax.random.split(key, 5)

    # Small, module-consistent demo problem.
    B = 8
    x = jax.random.normal(kx, (B, DIM_IN), dtype=jnp.float32)
    # Deterministic "Kaiming-ish" init, PyTorch nn.Linear weight layout (out, in).
    bound = 1.0 / sqrt(DIM_IN)
    wq = jax.random.uniform(kq, (DIM_K, DIM_IN), jnp.float32, -bound, bound)
    wk = jax.random.uniform(kk, (DIM_K, DIM_IN), jnp.float32, -bound, bound)
    wv = jax.random.uniform(kv, (DIM_V, DIM_IN), jnp.float32, -bound, bound)

    # Weight packing happens ONCE, outside the per-call hot path.
    w_packed = pack_weights(wq, wk, wv)

    out = multi_head_self_attention(x, w_packed)
    out = jax.block_until_ready(out)
    ref = reference(x, wq, wk, wv)
    assert out.shape == (B, DIM_V)
    assert jnp.allclose(out, ref, atol=1e-4, rtol=1e-4), "mismatch vs reference"

    # Also exercise the batched multi-tile grid path (padding + >1 grid step).
    B2 = 300
    x2 = jax.random.normal(kx2, (B2, DIM_IN), dtype=jnp.float32)
    out2 = jax.block_until_ready(multi_head_self_attention(x2, w_packed))
    ref2 = reference(x2, wq, wk, wv)
    assert out2.shape == (B2, DIM_V)
    assert jnp.allclose(out2, ref2, atol=1e-4, rtol=1e-4), "batched mismatch vs reference"

    print("KERNEL_OK")
</pallas_src>

<mosaic_0001>
module attributes {stable_mosaic.version = 11 : i64} {
  func.func @mhsa_kernel(%arg0: i32, %arg1: memref<8x32xf32, #tpu.memory_space<vmem>>, %arg2: memref<32x72xf32, #tpu.memory_space<vmem>>, %arg3: memref<8x16xf32, #tpu.memory_space<vmem>>) attributes {dimension_semantics = [#tpu.dimension_semantics<parallel>], iteration_bounds = array<i64: 1>, scalar_prefetch = 0 : i64, scratch_operands = 0 : i64, tpu.core_type = #tpu.core_type<tc>, window_params = [{transform_indices = @transform_0, window_bounds = array<i64: 8, 32>}, {pipeline_mode = #tpu.pipeline_mode<synchronous>, transform_indices = @transform_1, window_bounds = array<i64: 32, 72>}, {transform_indices = @transform_2, window_bounds = array<i64: 8, 16>}]} {
    %c0 = arith.constant 0 : index
    %c0_0 = arith.constant 0 : index
    %0 = vector.load %arg1[%c0, %c0_0] : memref<8x32xf32, #tpu.memory_space<vmem>>, vector<8x32xf32>
    %c0_1 = arith.constant 0 : index
    %c0_2 = arith.constant 0 : index
    %1 = vector.load %arg2[%c0_1, %c0_2] : memref<32x72xf32, #tpu.memory_space<vmem>>, vector<32x72xf32>
    %cst = arith.constant dense<0.000000e+00> : vector<8x72xf32>
    %2 = tpu.matmul %0, %1, %cst {dimension_numbers = #tpu.dot_dimension_numbers<[1], [0], [0], [1], [0, 0, 1, 1], [], []>} : vector<8x32xf32>, vector<32x72xf32>, vector<8x72xf32> -> vector<8x72xf32>
    %3 = vector.extract_strided_slice %2 {offsets = [0, 0], sizes = [8, 8], strides = [1, 1]} : vector<8x72xf32> to vector<8x8xf32>
    %4 = vector.extract_strided_slice %2 {offsets = [0, 8], sizes = [8, 8], strides = [1, 1]} : vector<8x72xf32> to vector<8x8xf32>
    %5 = vector.extract_strided_slice %2 {offsets = [0, 16], sizes = [8, 8], strides = [1, 1]} : vector<8x72xf32> to vector<8x8xf32>
    %6 = vector.extract_strided_slice %2 {offsets = [0, 24], sizes = [8, 16], strides = [1, 1]} : vector<8x72xf32> to vector<8x16xf32>
    %7 = vector.extract_strided_slice %2 {offsets = [0, 40], sizes = [8, 16], strides = [1, 1]} : vector<8x72xf32> to vector<8x16xf32>
    %8 = vector.extract_strided_slice %2 {offsets = [0, 56], sizes = [8, 16], strides = [1, 1]} : vector<8x72xf32> to vector<8x16xf32>
    %9 = arith.mulf %3, %5 : vector<8x8xf32>
    %cst_3 = arith.constant dense<0.000000e+00> : vector<8xf32>
    %10 = vector.multi_reduction <add>, %9, %cst_3 [1] : vector<8x8xf32> to vector<8xf32>
    %11 = vector.shape_cast %10 : vector<8xf32> to vector<8x1xf32>
    %12 = arith.mulf %4, %5 : vector<8x8xf32>
    %cst_4 = arith.constant dense<0.000000e+00> : vector<8xf32>
    %13 = vector.multi_reduction <add>, %12, %cst_4 [1] : vector<8x8xf32> to vector<8xf32>
    %14 = vector.shape_cast %13 : vector<8xf32> to vector<8x1xf32>
    %15 = math.absf %11 : vector<8x1xf32>
    %cst_5 = arith.constant 0.000000e+00 : f32
    %16 = vector.broadcast %cst_5 : f32 to vector<8x1xf32>
    %17 = arith.subf %16, %15 : vector<8x1xf32>
    %18 = math.exp %17 : vector<8x1xf32>
    %cst_6 = arith.constant 0.000000e+00 : f32
    %19 = vector.broadcast %cst_6 : f32 to vector<8x1xf32>
    %20 = arith.cmpf oge, %11, %19 : vector<8x1xf32>
    %cst_7 = arith.constant 1.000000e+00 : f32
    %21 = vector.broadcast %cst_7 : f32 to vector<8x1xf32>
    %22 = arith.addf %21, %18 : vector<8x1xf32>
    %cst_8 = arith.constant 1.000000e+00 : f32
    %23 = vector.broadcast %cst_8 : f32 to vector<8x1xf32>
    %24 = arith.divf %23, %22 : vector<8x1xf32>
    %cst_9 = arith.constant 1.000000e+00 : f32
    %25 = vector.broadcast %cst_9 : f32 to vector<8x1xf32>
    %26 = arith.addf %25, %18 : vector<8x1xf32>
    %27 = arith.divf %18, %26 : vector<8x1xf32>
    %28 = arith.select %20, %24, %27 : vector<8x1xi1>, vector<8x1xf32>
    %29 = math.absf %14 : vector<8x1xf32>
    %cst_10 = arith.constant 0.000000e+00 : f32
    %30 = vector.broadcast %cst_10 : f32 to vector<8x1xf32>
    %31 = arith.subf %30, %29 : vector<8x1xf32>
    %32 = math.exp %31 : vector<8x1xf32>
    %cst_11 = arith.constant 0.000000e+00 : f32
    %33 = vector.broadcast %cst_11 : f32 to vector<8x1xf32>
    %34 = arith.cmpf oge, %14, %33 : vector<8x1xf32>
    %cst_12 = arith.constant 1.000000e+00 : f32
    %35 = vector.broadcast %cst_12 : f32 to vector<8x1xf32>
    %36 = arith.addf %35, %32 : vector<8x1xf32>
    %cst_13 = arith.constant 1.000000e+00 : f32
    %37 = vector.broadcast %cst_13 : f32 to vector<8x1xf32>
    %38 = arith.divf %37, %36 : vector<8x1xf32>
    %cst_14 = arith.constant 1.000000e+00 : f32
    %39 = vector.broadcast %cst_14 : f32 to vector<8x1xf32>
    %40 = arith.addf %39, %32 : vector<8x1xf32>
    %41 = arith.divf %32, %40 : vector<8x1xf32>
    %42 = arith.select %34, %38, %41 : vector<8x1xi1>, vector<8x1xf32>
    %43 = vector.broadcast %28 : vector<8x1xf32> to vector<8x16xf32>
    %44 = arith.mulf %43, %7 : vector<8x16xf32>
    %45 = arith.addf %6, %44 : vector<8x16xf32>
    %46 = vector.broadcast %42 : vector<8x1xf32> to vector<8x16xf32>
    %47 = arith.mulf %46, %8 : vector<8x16xf32>
    %48 = arith.addf %45, %47 : vector<8x16xf32>
    %c0_15 = arith.constant 0 : index
    %c0_16 = arith.constant 0 : index
    %49 = vector.load %arg3[%c0_15, %c0_16] : memref<8x16xf32, #tpu.memory_space<vmem>>, vector<8x16xf32>
    tpu.vector_store %arg3[%c0_15, %c0_16], %48 {strides = array<i32>} : memref<8x16xf32, #tpu.memory_space<vmem>>, vector<8x16xf32>,
    return
  }
  func.func @transform_0(%arg0: i32) -> (i32, i32) {
    %c0_i32 = arith.constant 0 : i32
    %c0_i32_0 = arith.constant 0 : i32
    return %arg0, %c0_i32 : i32, i32
  }
  func.func @transform_1(%arg0: i32) -> (i32, i32) {
    %c0_i32 = arith.constant 0 : i32
    %c0_i32_0 = arith.constant 0 : i32
    %c0_i32_1 = arith.constant 0 : i32
    return %c0_i32, %c0_i32_0 : i32, i32
  }
  func.func @transform_2(%arg0: i32) -> (i32, i32) {
    %c0_i32 = arith.constant 0 : i32
    %c0_i32_0 = arith.constant 0 : i32
    return %arg0, %c0_i32 : i32, i32
  }
}

</mosaic_0001>

<bundles_post_ra>
// kernel: multi_head_self_attention.1
= control target key start
LH: loop header
LB: loop body
LE: loop exit
PB: predicated region body
PF: predicated region fallthrough
CT: control target
= control target key end

     0   :  { %7 = vsyncpa [#allocation3], 0  ;;  %s328_s0 = inlined_call_operand.hbm [shape: f32[8,32], index: 0, kind: input, shape index: {}]   ;;  %s329_s1 = inlined_call_operand.hbm [shape: f32[32,72], index: 1, kind: input, shape index: {}]   ;;  %s330_s2 = inlined_call_operand.hbm [shape: f32[8,16], index: 2, kind: output, shape index: {}]  }
   0x1   :  { %8 = vsyncpa [#allocation6], 0 }
   0x2   :  { %9 = vsyncpa [#allocation4], 0  ;;  %s293_s9 = smov [#allocation2]   ;;  %s294_s11 = smov [#allocation5]  }
   0x3   :  { %s16_s10 = sshll.u32 %s293_s9, 4  ;;  %s25_s12 = sshll.u32 %s294_s11, 4  ;;  %s17_s10 = int_to_ptr.vmem [resolvable:$true] %s16_s10  ;;  %s26_s12 = int_to_ptr.vmem [resolvable:$true] %s25_s12 }
   0x4   :  { %s235_s13 = scalar_lea.vmem %s17_s10, 128  ;;  %p240_p1 = scmp.lt.s32.totalorder %s17_s10, %s17_s10 }
   0x5   :  { %p236_p0 = scmp.ne.s32.totalorder %s17_s10, %s235_s13  ;;  %p241_p2 = scmp.lt.s32.totalorder %s235_s13, %s235_s13 }
   0x7   :  { %p242_p3 = por %p241_p2, %p240_p1 }
   0x9   :  { %p243_p4 = pnand %p242_p3, %p236_p0 }
   0xb   :  { %246 = shalt.err (!%p243_p4)
}
   0xc   :  { %19 = dma.hbm_to_vmem [thread:$0]  %s328_s0, 128, %s17_s10, [#allocation3]  }
   0xd   :  { %s255_s16 = scalar_lea.vmem %s26_s12, 512  ;;  %p260_p6 = scmp.lt.s32.totalorder %s26_s12, %s26_s12 }
   0xe   :  { %p256_p5 = scmp.ne.s32.totalorder %s26_s12, %s255_s16  ;;  %p261_p7 = scmp.lt.s32.totalorder %s255_s16, %s255_s16 }
  0x10   :  { %p262_p8 = por %p261_p7, %p260_p6 }
  0x12   :  { %p263_p9 = pnand %p262_p8, %p256_p5 }
  0x14   :  { %266 = shalt.err (!%p263_p9)
}
  0x15   :  { %s295_s17 = smov 128   ;;  %s296_s18 = smov 8  }
  0x16   :  { %31 = dma.hbm_to_vmem [thread:$0]  %s329_s1, 512, %s26_s12, [#allocation6], %s295_s17, %s295_s17, %s296_s18  }
  0x17   :  { %287 = dma.done.wait [#allocation3], 128  }
  0x18   :  { %288 = vsyncadd [#allocation3], 4294967168 }
  0x19   :  { %289 = dma.done.wait [#allocation6], 512  }
  0x1a   :  { %290 = vsyncadd [#allocation6], 4294966784  ;;  %v297_v0 = vmov 0.0   ;;  %vm298_vm0 = vmmov 0   ;;  %v42_v1 = vld [vmem:[#allocation5 + $0x18] sm:$0xff]  ;;  %v41_v2 = vld [vmem:[#allocation5 + $0x10] sm:$0xff] }
  0x1b   :  { %197 = vmatprep.subr.mxu0 %v297_v0  ;;  %205 = vmatprep.mubr.msk.f32.mxu0 %vm298_vm0, %v297_v0  ;;  %v40_v3 = vld [vmem:[#allocation5 + $0x8] sm:$0xff]  ;;  %v39_v4 = vld [vmem:[#allocation5] sm:$0xff]  ;;  %v38_v5 = vld [vmem:[#allocation2] sm:$0xff]  ;;  %vm43_vm1 = vcmask 261120   ;;  %s299_s0 = smov 120   ;;  %s300_s1 = smov 112  }
  0x1c   :  { %198 = vmatpush3.msra.mxu0 %v42_v1  ;;  %vm122_vm2 = vcmask 64512   ;;  %s301_s21 = smov 96   ;;  %s302_s22 = smov 104   ;;  %vm173_vm5 = vcmask 130048  }
  0x1d   :  { %199 = vmatprep.subr.mxu0 %v297_v0  ;;  %s303_s23 = smov [#allocation7]  }
  0x1e   :  { %200 = vmatpush3.msra.mxu0 %v41_v2  ;;  %s181_s24 = sshll.u32 %s303_s23, 4  ;;  %s182_s24 = int_to_ptr.vmem [resolvable:$true] %s181_s24 }
  0x1f   :  { %201 = vmatprep.subr.mxu0 %v297_v0  ;;  %s267_s25 = scalar_lea.vmem %s182_s24, 128  ;;  %p272_p11 = scmp.lt.s32.totalorder %s182_s24, %s182_s24 }
  0x20   :  { %202 = vmatpush3.msra.mxu0 %v40_v3  ;;  %p268_p10 = scmp.ne.s32.totalorder %s182_s24, %s267_s25  ;;  %p273_p12 = scmp.lt.s32.totalorder %s267_s25, %s267_s25 }
  0x21   :  { %203 = vmatprep.subr.mxu0 %v297_v0 }
  0x22   :  { %204 = vmatpush3.msra.mxu0 %v39_v4  ;;  %p274_p13 = por %p273_p12, %p272_p11 }
  0x23   :  { %206 = vmatmul.mubr.msk.f32.vlgmr.msra.gmra.mxu0 %vm43_vm1, %v38_v5 }
  0x24   :  { %p275_p0 = pnand %p274_p13, %p268_p10 }
  0xe3   :  { %v113_v6 = vpop.f32.mrf.mxu0 }
  0xe4   :  { %126 = vrot.lane.b32.xlu0 %v113_v6, %s299_s0 }
  0xe5   :  { %v207_v7 = vpop.f32.mrf.mxu0 }
  0xe8   :  { %118 = vrot.lane.b32.xlu0 %v113_v6, %s300_s1 }
 0x156   :  { %v127_v8 = vpop.permute.xlu0 %126 }
 0x157   :  { %v129_v9 = vmul.f32 %v127_v8, %v113_v6 }
 0x159   :  { %131 = vrot.lane.b32.xlu1 %v129_v9, %s299_s0 }
 0x15a   :  { %v119_v10 = vpop.permute.xlu0 %118 }
 0x15b   :  { %v121_v11 = vmul.f32 %v119_v10, %v113_v6 }
 0x15d   :  { %v123_v12 = vsel %vm122_vm2, %v121_v11, 0.0 }
 0x17d   :  { %124 = vadd.xlane.f32.xlu1 %v123_v12 }
 0x1cb   :  { %v132_v13 = vpop.permute.xlu1 %131 }
 0x1cc   :  { %v134_v14 = vsel %vm122_vm2, %v132_v13, 0.0 }
 0x1cd   :  { %135 = vadd.xlane.f32.xlu0 %v134_v14 }
 0x206   :  { %v125_v15 = vpop.xlane.xlu1 %124 }
 0x207   :  { %v137_v16 = vand.u32 2147483647, %v125_v15  ;;  %vm141_vm3 = vcmp.ge.f32.partialorder %v125_v15, 0.0 }
 0x209   :  { %v138_v17 = vsub.f32 0.0, %v137_v16 }
 0x20b   :  { %v139_v18 = vmul.f32 1.442695, %v138_v17 }
 0x20d   :  { %219 = vpow2.f32 %v139_v18 }
 0x21a   :  { %v220_v19 = vpop.eup %219 }
 0x21b   :  { %v142_v20 = vadd.f32 1.0, %v220_v19 }
 0x21d   :  { %221 = vrcp.f32 %v142_v20 }
 0x22a   :  { %v222_v21 = vpop.eup %221 }
 0x22b   :  { %v145_v22 = vmul.f32 %v222_v21, %v220_v19 }
 0x22d   :  { %v146_v23 = vsel %vm141_vm3, %v222_v21, %v145_v22 }
 0x22e   :  { %v157_v24 = vmul.f32 %v146_v23, %v113_v6 }
 0x230   :  { %159 = vrot.lane.b32.xlu0 %v157_v24, %s300_s1 }
 0x256   :  { %v136_v25 = vpop.xlane.xlu0 %135 }
 0x257   :  { %v147_v26 = vand.u32 2147483647, %v136_v25  ;;  %vm151_vm4 = vcmp.ge.f32.partialorder %v136_v25, 0.0 }
 0x259   :  { %v148_v27 = vsub.f32 0.0, %v147_v26 }
 0x25b   :  { %v149_v28 = vmul.f32 1.442695, %v148_v27 }
 0x25d   :  { %223 = vpow2.f32 %v149_v28 }
 0x26a   :  { %v224_v29 = vpop.eup %223 }
 0x26b   :  { %v152_v30 = vadd.f32 1.0, %v224_v29 }
 0x26d   :  { %225 = vrcp.f32 %v152_v30 }
 0x27a   :  { %v226_v31 = vpop.eup %225 }
 0x27b   :  { %v155_v32 = vmul.f32 %v226_v31, %v224_v29 }
 0x27d   :  { %v156_v33 = vsel %vm151_vm4, %v226_v31, %v155_v32 }
 0x27e   :  { %v163_v34 = vmul.f32 %v156_v33, %v113_v6 }
 0x280   :  { %165 = vrot.lane.b32.xlu1 %v163_v34, %s301_s21 }
 0x2a2   :  { %v160_v35 = vpop.permute.xlu0 %159 }
 0x2a3   :  { %v162_v36 = vadd.f32 %v160_v35, %v113_v6 }
 0x2f2   :  { %v166_v37 = vpop.permute.xlu1 %165 }
 0x2f3   :  { %v168_v38 = vadd.f32 %v166_v37, %v162_v36 }
 0x2f5   :  { %170 = vrot.lane.b32.xlu1 %v168_v38, %s302_s22 }
 0x367   :  { %v171_v39 = vpop.permute.xlu1 %170 }
 0x368   :  { %174 = vst.msk [vmem:[#allocation7] sm:$0xff] %vm173_vm5, %v171_v39 }
 0x369   :  { %278 = shalt.err (!%p275_p0)
}
 0x36a   :  { %184 = dma.vmem_to_hbm [thread:$0]  %s182_s24, 128, %s330_s2, [#allocation4]  }
 0x36b   :  { %291 = dma.done.wait [#allocation4], 128  }
 0x36c   :  { %292 = vsyncadd [#allocation4], 4294967168 }
 0x36d   :  { %188 = vsyncpa [#allocation3], 1 }
 0x36e   :  { %189 = vsyncpa [#allocation6], 1 }
 0x36f   :  { %190 = vsyncpa [#allocation4], 1 }

</bundles_post_ra>
